<compile_context>
chip_gen: v7x
topology: tpu7x:2x2x1
jax: 0.10.0
libtpu: 0.0.40
codegen_flags: <defaults>
</compile_context>

<pallas_src>
import functools

import jax
import jax.numpy as jnp
from jax.experimental import pallas as pl
from jax.experimental.pallas import tpu as pltpu


# ----------------------------------------------------------------------------
# VMEM budgeting helpers
# ----------------------------------------------------------------------------
def _vmem_capacity_bytes():
    try:
        return int(pltpu.get_tpu_info().vmem_capacity_bytes)
    except Exception:
        return 64 * 1024 * 1024  # conservative (v7x per-TC physical VMEM)


def _resident_vmem_est(batch, feat, tile_rows, x_bytes, out_bytes):
    return (2 * batch * feat * x_bytes            # resident X (count 2 bufs, safe)
            + 2 * tile_rows * batch * out_bytes   # double-buffered output tile
            + 2 * tile_rows * 128 * 4             # rn_col tile (lane padded)
            + 2 * 8 * max(batch, 128) * 4)        # rn_row (sublane padded)


def _tiled_vmem_est(feat, tile_rows, tile_cols, x_bytes, out_bytes):
    return (2 * tile_rows * feat * x_bytes
            + 2 * tile_cols * feat * x_bytes
            + 2 * tile_rows * tile_cols * out_bytes
            + 2 * tile_rows * 128 * 4
            + 2 * 8 * max(tile_cols, 128) * 4)


def _pick_tile_rows_resident(batch, feat, budget, x_bytes, out_bytes):
    """Largest row tile that fits the budget; prefer >= 4 even grid steps."""
    cands = [c for c in (512, 256, 128, 64, 32, 16, 8) if batch % c == 0]
    if not cands:
        cands = [batch]
    fitting = [c for c in cands
               if _resident_vmem_est(batch, feat, c, x_bytes, out_bytes) <= budget]
    if not fitting:
        return None
    for pred in (lambda n: n >= 4 and n % 2 == 0,   # megacore balance + pipelining
                 lambda n: n >= 2,
                 lambda n: True):
        sel = [c for c in fitting if pred(batch // c)]
        if sel:
            return sel[0]                           # lists are descending -> largest
    return fitting[0]


def _pick_tiles_2d(batch, feat, budget, x_bytes, out_bytes):
    col_cands = [c for c in (1024, 512, 256, 128) if batch % c == 0] or [batch]
    row_cands = [c for c in (512, 256, 128, 64, 32, 16, 8) if batch % c == 0] or [batch]
    for tc in col_cands:
        for tr in row_cands:
            if _tiled_vmem_est(feat, tr, tc, x_bytes, out_bytes) <= budget:
                return tr, tc
    return row_cands[-1], col_cands[-1]


# ----------------------------------------------------------------------------
# Kernel bodies
# ----------------------------------------------------------------------------
def _gk_resident_body(coef_ref, rni_ref, rnj_ref, x_ref, o_ref, *, tile_rows):
    # Full (centered) X is resident in VMEM; slice this step's row tile from it.
    i = pl.program_id(0)
    r0 = pl.multiple_of(i * tile_rows, tile_rows)
    xi = x_ref[pl.ds(r0, tile_rows), :]                        # (TB, F)
    # Gram tile on the MXU: g[p, j] = <x_tile[p], x[j]>        -> (TB, B), f32 acc.
    g = jax.lax.dot_general(xi, x_ref[...], (((1,), (1,)), ((), ())),
                            preferred_element_type=jnp.float32)
    # rn_* are pre-scaled by c = -0.5/sigma^2; coef = -2c = 1/sigma^2.
    t = rni_ref[...] + rnj_ref[...] + coef_ref[0] * g          # = -l2 / (2*sigma^2)
    o_ref[...] = jnp.exp(jnp.minimum(t, 0.0)).astype(o_ref.dtype)


def _gk_tiled_body(coef_ref, rni_ref, rnj_ref, xr_ref, xc_ref, o_ref):
    g = jax.lax.dot_general(xr_ref[...], xc_ref[...], (((1,), (1,)), ((), ())),
                            preferred_element_type=jnp.float32)
    t = rni_ref[...] + rnj_ref[...] + coef_ref[0] * g
    o_ref[...] = jnp.exp(jnp.minimum(t, 0.0)).astype(o_ref.dtype)


# ----------------------------------------------------------------------------
# Wrapper
# ----------------------------------------------------------------------------
def gaussian_kernel(x, *, sigma=None, track_running_stats=True, alpha=1.0,
                    tile_rows=None, tile_cols=None, use_bf16_matmul=False,
                    out_dtype=jnp.float32):
    """Pallas implementation of GaussianKernel.forward.

    x : (B, F) float32.  Returns the (B, B) kernel matrix.
    """
    assert track_running_stats or sigma is not None
    assert x.ndim == 2
    x = x.astype(jnp.float32)
    batch, feat = x.shape

    # ---- hoisted O(B*F) prep: runs ONCE in XLA, not per grid step -----------
    # Centering leaves pairwise distances unchanged; it removes the cancellation
    # hazard in the closed-form mean and improves Gram-trick conditioning.
    xc = x - jnp.mean(x, axis=0, keepdims=True)
    rn = jnp.sum(xc * xc, axis=1)                               # (B,) ||x_i||^2

    if track_running_stats:
        # mean_{i,j} ||x_i - x_j||^2 = (2*B*sum||x_i||^2 - 2*||sum_i x_i||^2)/B^2
        col_sum = jnp.sum(xc, axis=0)                           # ~0 after centering
        mean_l2 = (2.0 * batch * jnp.sum(rn)
                   - 2.0 * jnp.sum(col_sum * col_sum)) / float(batch * batch)
        sigma_sq = jnp.float32(alpha) * mean_l2
    else:
        sigma_sq = jnp.float32(float(sigma) ** 2)

    c = -0.5 / sigma_sq                                         # negative scalar
    rn_col = (rn * c).reshape(batch, 1).astype(jnp.float32)     # pre-scaled (B,1)
    rn_row = (rn * c).reshape(1, batch).astype(jnp.float32)     # pre-scaled (1,B)
    coef = jnp.reshape(-2.0 * c, (1,)).astype(jnp.float32)      # = 1/sigma^2, SMEM

    # bf16 MXU operands (f32 accumulation) are opt-in; epilogue stays f32.
    x_kern = xc.astype(jnp.bfloat16) if use_bf16_matmul else xc
    x_bytes = 2 if use_bf16_matmul else 4
    out_bytes = jnp.dtype(out_dtype).itemsize

    cap = _vmem_capacity_bytes()
    budget = int(cap * 0.7)

    cost = pl.CostEstimate(
        flops=2 * batch * batch * feat + 4 * batch * batch,
        transcendentals=batch * batch,
        bytes_accessed=batch * feat * x_bytes + batch * batch * out_bytes
                       + 2 * batch * 4)

    # ---- choose path: resident full-X (1D grid) vs 2D row/col tiling --------
    force_2d = tile_cols is not None and tile_cols < batch
    if force_2d:
        use_2d = True
    else:
        if tile_rows is None:
            tile_rows = _pick_tile_rows_resident(batch, feat, budget,
                                                 x_bytes, out_bytes)
        use_2d = tile_rows is None   # resident X would not fit the VMEM budget

    if not use_2d:
        assert batch % tile_rows == 0
        n_blocks = batch // tile_rows
        est = _resident_vmem_est(batch, feat, tile_rows, x_bytes, out_bytes)
        vmem_limit = int(min(cap * 0.85, max(est * 2 + (4 << 20), 32 << 20)))
        kernel = functools.partial(_gk_resident_body, tile_rows=tile_rows)
        grid_spec = pltpu.PrefetchScalarGridSpec(
            num_scalar_prefetch=0,
            grid=(n_blocks,),
            in_specs=[
                pl.BlockSpec(memory_space=pltpu.MemorySpace.SMEM),   # coef (1,)
                pl.BlockSpec((tile_rows, 1), lambda i: (i, 0)),      # rn_col tile
                pl.BlockSpec((1, batch), lambda i: (0, 0)),          # rn_row (resident)
                pl.BlockSpec((batch, feat), lambda i: (0, 0)),       # X (resident, 1 DMA)
            ],
            out_specs=pl.BlockSpec((tile_rows, batch), lambda i: (i, 0)),
        )
        dim_sem = ("parallel",)
        call_args = (coef, rn_col, rn_row, x_kern)
    else:
        auto_tr, auto_tc = _pick_tiles_2d(batch, feat, budget, x_bytes, out_bytes)
        tr = tile_rows if tile_rows is not None else auto_tr
        tc = tile_cols if tile_cols is not None else auto_tc
        assert batch % tr == 0 and batch % tc == 0
        est = _tiled_vmem_est(feat, tr, tc, x_bytes, out_bytes)
        vmem_limit = int(min(cap * 0.85, max(est * 2 + (4 << 20), 32 << 20)))
        kernel = _gk_tiled_body
        grid_spec = pltpu.PrefetchScalarGridSpec(
            num_scalar_prefetch=0,
            grid=(batch // tr, batch // tc),
            in_specs=[
                pl.BlockSpec(memory_space=pltpu.MemorySpace.SMEM),   # coef (1,)
                pl.BlockSpec((tr, 1), lambda i, j: (i, 0)),          # rn_col tile
                pl.BlockSpec((1, tc), lambda i, j: (0, j)),          # rn_row tile
                pl.BlockSpec((tr, feat), lambda i, j: (i, 0)),       # X row block
                pl.BlockSpec((tc, feat), lambda i, j: (j, 0)),       # X col block
            ],
            out_specs=pl.BlockSpec((tr, tc), lambda i, j: (i, j)),
        )
        dim_sem = ("parallel", "parallel")
        call_args = (coef, rn_col, rn_row, x_kern, x_kern)

    return pl.pallas_call(
        kernel,
        out_shape=jax.ShapeDtypeStruct((batch, batch), out_dtype),
        grid_spec=grid_spec,
        compiler_params=pltpu.CompilerParams(
            dimension_semantics=dim_sem,
            vmem_limit_bytes=vmem_limit),
        cost_estimate=cost,
    )(*call_args)


def gaussian_kernel_ref(x, *, sigma=None, track_running_stats=True, alpha=1.0):
    """Pure-JAX reference mirroring the PyTorch forward exactly."""
    diff = x[None, :, :] - x[:, None, :]
    l2 = jnp.sum(diff * diff, axis=2)
    if track_running_stats:
        sigma_sq = alpha * jnp.mean(l2)
    else:
        sigma_sq = sigma * sigma
    return jnp.exp(-l2 / (2.0 * sigma_sq))


if __name__ == "__main__":
    key = jax.random.PRNGKey(0)
    B, F = 64, 128
    x = jax.random.normal(key, (B, F), dtype=jnp.float32)

    # 1) track_running_stats=True (sigma^2 from the batch), resident-X path.
    out = jax.block_until_ready(gaussian_kernel(x, alpha=1.0))
    ref = gaussian_kernel_ref(x, alpha=1.0)
    assert out.shape == (B, B)
    assert jnp.allclose(out, ref, atol=1e-3, rtol=1e-3), "mismatch (running stats)"

    # 2) fixed sigma, no running stats.
    out_fixed = jax.block_until_ready(
        gaussian_kernel(x, sigma=8.0, track_running_stats=False))
    ref_fixed = gaussian_kernel_ref(x, sigma=8.0, track_running_stats=False)
    assert jnp.allclose(out_fixed, ref_fixed, atol=1e-3, rtol=1e-3), "mismatch (fixed sigma)"

    # 3) opt-in bf16 MXU operands (f32 accumulation); looser tolerance.
    out_bf16 = jax.block_until_ready(gaussian_kernel(x, alpha=1.0, use_bf16_matmul=True))
    assert jnp.allclose(out_bf16, ref, atol=1e-2, rtol=1e-2), "mismatch (bf16 matmul)"

    # 4) 2D (row, col)-tiled path — used automatically when resident X would
    #    not fit the VMEM budget (large B on v7x); forced here with small tiles.
    x2 = jax.random.normal(jax.random.PRNGKey(1), (256, 64), dtype=jnp.float32)
    out2 = jax.block_until_ready(
        gaussian_kernel(x2, alpha=1.0, tile_rows=64, tile_cols=128))
    ref2 = gaussian_kernel_ref(x2, alpha=1.0)
    assert jnp.allclose(out2, ref2, atol=1e-3, rtol=1e-3), "mismatch (2D tiled)"

    # TODO(synk): the module's stateful self.sigma_square running-buffer update is a
    # host-side attribute write; the kernel recomputes sigma^2 from the batch per call.
    print("KERNEL_OK")
</pallas_src>

<mosaic_0001>
module attributes {stable_mosaic.version = 11 : i64} {
  func.func @_gk_resident_body(%arg0: i32, %arg1: memref<1xf32, #tpu.memory_space<smem>>, %arg2: memref<16x1xf32, #tpu.memory_space<vmem>>, %arg3: memref<1x64xf32, #tpu.memory_space<vmem>>, %arg4: memref<64x128xf32, #tpu.memory_space<vmem>>, %arg5: memref<16x64xf32, #tpu.memory_space<vmem>>) attributes {dimension_semantics = [#tpu.dimension_semantics<parallel>], iteration_bounds = array<i64: 4>, scalar_prefetch = 0 : i64, scratch_operands = 0 : i64, tpu.core_type = #tpu.core_type<tc>, window_params = [{transform_indices = @transform_0, window_bounds = array<i64: 1>}, {transform_indices = @transform_1, window_bounds = array<i64: 16, 1>}, {pipeline_mode = #tpu.pipeline_mode<synchronous>, transform_indices = @transform_2, window_bounds = array<i64: 1, 64>}, {pipeline_mode = #tpu.pipeline_mode<synchronous>, transform_indices = @transform_3, window_bounds = array<i64: 64, 128>}, {transform_indices = @transform_4, window_bounds = array<i64: 16, 64>}]} {
    %c16_i32 = arith.constant 16 : i32
    %0 = arith.muli %arg0, %c16_i32 : i32
    %1 = tpu.assume_multiple %0, 16 : i32
    %2 = arith.index_cast %1 : i32 to index
    %c0 = arith.constant 0 : index
    %3 = vector.load %arg4[%2, %c0] : memref<64x128xf32, #tpu.memory_space<vmem>>, vector<16x128xf32>
    %c0_0 = arith.constant 0 : index
    %c0_1 = arith.constant 0 : index
    %4 = vector.load %arg4[%c0_0, %c0_1] : memref<64x128xf32, #tpu.memory_space<vmem>>, vector<64x128xf32>
    %cst = arith.constant dense<0.000000e+00> : vector<16x64xf32>
    %5 = tpu.matmul %3, %4, %cst {dimension_numbers = #tpu.dot_dimension_numbers<[1], [1], [0], [0], [0, 0, 1, 0], [], []>} : vector<16x128xf32>, vector<64x128xf32>, vector<16x64xf32> -> vector<16x64xf32>
    %c0_2 = arith.constant 0 : index
    %c0_3 = arith.constant 0 : index
    %6 = vector.load %arg2[%c0_2, %c0_3] : memref<16x1xf32, #tpu.memory_space<vmem>>, vector<16x1xf32>
    %c0_4 = arith.constant 0 : index
    %c0_5 = arith.constant 0 : index
    %7 = vector.load %arg3[%c0_4, %c0_5] : memref<1x64xf32, #tpu.memory_space<vmem>>, vector<1x64xf32>
    %8 = vector.broadcast %6 : vector<16x1xf32> to vector<16x64xf32>
    %9 = vector.broadcast %7 : vector<1x64xf32> to vector<16x64xf32>
    %10 = arith.addf %8, %9 : vector<16x64xf32>
    %c0_6 = arith.constant 0 : index
    %11 = memref.load %arg1[%c0_6] : memref<1xf32, #tpu.memory_space<smem>>
    %12 = vector.broadcast %11 : f32 to vector<16x64xf32>
    %13 = arith.mulf %12, %5 : vector<16x64xf32>
    %14 = arith.addf %10, %13 : vector<16x64xf32>
    %cst_7 = arith.constant 0.000000e+00 : f32
    %15 = vector.broadcast %cst_7 : f32 to vector<16x64xf32>
    %16 = arith.minimumf %14, %15 : vector<16x64xf32>
    %17 = math.exp %16 : vector<16x64xf32>
    %c0_8 = arith.constant 0 : index
    %c0_9 = arith.constant 0 : index
    %18 = vector.load %arg5[%c0_8, %c0_9] : memref<16x64xf32, #tpu.memory_space<vmem>>, vector<16x64xf32>
    tpu.vector_store %arg5[%c0_8, %c0_9], %17 {strides = array<i32>} : memref<16x64xf32, #tpu.memory_space<vmem>>, vector<16x64xf32>,
    return
  }
  func.func @transform_0(%arg0: i32) -> i32 {
    %c0_i32 = arith.constant 0 : i32
    %c0_i32_0 = arith.constant 0 : i32
    return %c0_i32 : i32
  }
  func.func @transform_1(%arg0: i32) -> (i32, i32) {
    %c0_i32 = arith.constant 0 : i32
    %c0_i32_0 = arith.constant 0 : i32
    return %arg0, %c0_i32 : i32, i32
  }
  func.func @transform_2(%arg0: i32) -> (i32, i32) {
    %c0_i32 = arith.constant 0 : i32
    %c0_i32_0 = arith.constant 0 : i32
    %c0_i32_1 = arith.constant 0 : i32
    return %c0_i32, %c0_i32_0 : i32, i32
  }
  func.func @transform_3(%arg0: i32) -> (i32, i32) {
    %c0_i32 = arith.constant 0 : i32
    %c0_i32_0 = arith.constant 0 : i32
    %c0_i32_1 = arith.constant 0 : i32
    return %c0_i32, %c0_i32_0 : i32, i32
  }
  func.func @transform_4(%arg0: i32) -> (i32, i32) {
    %c0_i32 = arith.constant 0 : i32
    %c0_i32_0 = arith.constant 0 : i32
    return %arg0, %c0_i32 : i32, i32
  }
}

</mosaic_0001>

<bundles_post_ra>
// kernel: tpu_custom_call.1
= control target key start
LH: loop header
LB: loop body
LE: loop exit
PB: predicated region body
PF: predicated region fallthrough
CT: control target
= control target key end

     0   :  { %s737_s0 = inlined_call_operand.<no memory space> [shape: f32[1], index: 0, kind: input, shape index: {}]   ;;  %s738_s1 = inlined_call_operand.vmem [shape: f32[64,1], index: 1, kind: input, shape index: {}]   ;;  %s739_s2 = inlined_call_operand.vmem [shape: f32[1,64], index: 2, kind: input, shape index: {}]   ;;  %s740_s3 = inlined_call_operand.vmem [shape: f32[64,128], index: 3, kind: input, shape index: {}]   ;;  %s741_s4 = inlined_call_operand.hbm [shape: f32[64,64], index: 4, kind: output, shape index: {}]  }
   0x1   :  { %9 = sst [smem:[#allocation2]] %s737_s0 }
   0x2   :  { %10 = vsyncpa [#allocation4], 0 }
   0x3   :  { %12 = vsyncpa [#allocation4 + $0x1], 0  ;;  %s604_s17 = smov 0   ;;  %s606_s18 = smov 0  }
   0x4   :  { %s608_s19 = smov 0   ;;  %s610_s20 = smov 0  }
   0x5 LB: > { %s625_s0 = sadd.s32 4294967295, %s570_s20   ;;  %s401_s21 = sadd.s32 4294967294, %s570_s20   ;;  %s570_s20 = sphi %s610_s20, %s747_s20   ;;  %s566_s19 = sphi %s608_s19, %s746_s19   ;;  %s562_s18 = sphi %s606_s18, %s745_s18   ;;  %s558_s17 = sphi %s604_s17, %s744_s17  }
   0x6   : > { %s629_s22 = sadd.s32 1, %s570_s20   ;;  %s114_s23 = sadd.s32 1, %s566_s19 }
   0x7   : > { %s111_s24 = ssub.s32 %s570_s20, %s629_s22  ;;  %p124_p0 = scmp.ne.s32.totalorder %s566_s19, %s562_s18 }
   0x8   : > { %p112_p1 = scmp.eq.s32.totalorder %s111_s24, 0  ;;  %p125_p2 = scmp.eq.s32.totalorder %s625_s0, 3 }
   0x9   : > { %p130_p3 = scmp.ne.s32.totalorder %s562_s18, %s558_s17  ;;  %p131_p4 = scmp.eq.s32.totalorder %s401_s21, 3 }
   0xa   : > { %s640_s25 = scalar_select %p112_p1, %s566_s19, %s114_s23  }
   0xb   : > { %p642_p5 = por %p125_p2, %p124_p0  ;;  %p646_p6 = por %p131_p4, %p130_p3 }
   0xc   : > { %p404_p7 = scmp.ge.s32.totalorder %s570_s20, 1  ;;  %p167_p8 = scmp.lt.s32.totalorder %s570_s20, 5 }
   0xe   : > { %p168_p9 = pnand %p404_p7, %p167_p8 }
   0xf   : > { %v204_v0 = vld [vmem:[%s740_s3] sm:$0xff] (!%p168_p9)  ;;  %v205_v1 = vld [vmem:[%s740_s3 + $0x8] sm:$0xff] (!%p168_p9)  ;;  %v206_v2 = vld [vmem:[%s740_s3 + $0x10] sm:$0xff] (!%p168_p9)  ;;  %s408_s8 = sshll.u32 (!%p168_p9), %s625_s0, 4  ;;  %s406_s9 = sshll.u32 (!%p168_p9), %s625_s0, 1  ;;  %v572_v5 = vmov (!%p168_p9), 0  }
  0x10   : > { %171 = sbr.rel (%p168_p9) target bundleno = 297 (0x129), region = 36  ;;  %v445_v3 = vpack.c.bf16 (!%p168_p9), %v205_v1, %v204_v0  ;;  %v207_v4 = vld [vmem:[%s740_s3 + $0x18] sm:$0xff] (!%p168_p9)  ;;  %s201_s14 = scalar_lea.vmem (!%p168_p9), %s740_s3, %s408_s8  ;;  %503 = vset.pattern.permute.xlu0 (!%p168_p9), %v572_v5  ;;  %v208_v8 = vld [vmem:[%s740_s3 + $0x20] sm:$0xff] (!%p168_p9)  ;;  %v209_v9 = vld [vmem:[%s740_s3 + $0x28] sm:$0xff] (!%p168_p9)  ;;  %vm320_vm0 = vcmask (!%p168_p9), 523264  }
  0x11   : > { %p194_p10 = scmp.lt.s32.totalorder (!%p168_p9), %s406_s9, 7  ;;  %v449_v6 = vpack.c.bf16 (!%p168_p9), %v207_v4, %v206_v2  ;;  %v202_v7 = vld [vmem:[%s201_s14] sm:$0xff] (!%p168_p9)  ;;  %v453_v11 = vpack.c.bf16 (!%p168_p9), %v209_v9, %v208_v8  ;;  %v210_v13 = vld [vmem:[%s740_s3 + $0x30] sm:$0xff] (!%p168_p9)  ;;  %v211_v14 = vld [vmem:[%s740_s3 + $0x38] sm:$0xff] (!%p168_p9)  ;;  %s190_s12 = sand.u32 (!%p168_p9), 1, %s562_s18  }
  0x12   : > { %446 = vmatprep.subr.bf16.mxu0 (!%p168_p9), %v445_v3  ;;  %442 = vmatprep.mubr.f32.mxu0 (!%p168_p9), %v202_v7  ;;  %v457_v15 = vpack.c.bf16 (!%p168_p9), %v211_v14, %v210_v13  ;;  %v203_v16 = vld [vmem:[%s201_s14 + $0x8] sm:$0xff] (!%p168_p9)  ;;  %v409_v18 = vld [vmem:[%s739_s2] ss:$0 sm:$0xff] (!%p168_p9)  ;;  %s405_s13 = sshll.u32 (!%p168_p9), %s190_s12, 4  ;;  %s415_s14 = sshll.u32 (!%p168_p9), %s625_s0, 8 }
  0x13   : > { %448 = vmatpush3.bf16.xpose.msra.mxu0 (!%p168_p9), %v445_v3  ;;  %s692_s24 = scalar_lea.hbm (!%p168_p9), %s741_s4, %s415_s14  ;;  %s696_s28 = scalar_lea.sflag (!%p168_p9), [#allocation4], %s190_s12 }
  0x14   : > { %450 = vmatprep.subr.bf16.mxu0 (!%p168_p9), %v449_v6  ;;  %s573_s29 = smov (!%p168_p9), [#allocation3]  }
  0x17   : > { %s749_s9 = smov (!%p194_p10, %s406_s9), 7 }
  0x18   : > { %s407_s15 = sshll.u32 %s749_s9, 3  ;;  %s308_s9 = sld [smem:[#allocation2]] }
  0x19   : > { %s197_s30 = scalar_lea.vmem %s738_s1, %s407_s15  ;;  %s192_s15 = scalar_lea.vmem [#allocation3], %s405_s13 }
  0x1a   : > { %v287_v10 = vld [vmem:[%s197_s30] sm:$0xff]  ;;  %v288_v12 = vld [vmem:[%s197_s30 + $0x8] sm:$0xff]  ;;  %s337_s16 = sshll.u32 %s192_s15, 4  ;;  %s512_s30 = sshll.u32 %s573_s29, 4  ;;  %s694_s16 = int_to_ptr.vmem [resolvable:$true] %s337_s16  ;;  %s513_s30 = int_to_ptr.vmem [resolvable:$false] %s512_s30 }
  0x1b   : > { %292 = vperm.xlu0 %503, %v287_v10   ;;  %452 = vmatpush3.bf16.xpose.msra.mxu0 %v449_v6  ;;  %s508_s0 = scalar_lea.vmem %s694_s16, 256  ;;  %s514_s5 = scalar_lea.vmem %s513_s30, 512 }
  0x1c   : > { %454 = vmatprep.subr.bf16.mxu0 %v453_v11  ;;  %p509_p11 = scmp.ne.s32.totalorder %s694_s16, %s508_s0  ;;  %p515_p0 = scmp.lt.s32.totalorder %s694_s16, %s513_s30 }
  0x1d   : > { %p516_p1 = scmp.lt.s32.totalorder %s514_s5, %s508_s0 }
  0x1e   : > { %v309_v20 = vstv %s308_s9  ;;  %p510_p12 = pnand %p509_p11, %p642_p5 }
  0x1f   : > { %297 = vperm.xlu0 %503, %v288_v12   ;;  %p517_p2 = por %p516_p1, %p515_p0 }
  0x20   : > { %p511_p13 = pneg %p510_p12 }
  0x22   : > { %p518_p3 = pnand %p517_p2, %p511_p13 }
  0x23   : > { %456 = vmatpush3.bf16.xpose.msra.mxu0 %v453_v11 }
  0x24   : > { %458 = vmatprep.subr.bf16.mxu0 %v457_v15 }
  0x2b   : > { %460 = vmatpush3.bf16.xpose.msra.mxu0 %v457_v15 }
  0x32   : > { %443 = vmatmul.mubr.f32.vlgmr.msra.gmra.mrb[0].mxu0 %v203_v16 }
  0x9a   : > { %v293_v17 = vpop.permute.xlu0 %292 }
  0x9b   : > { %v306_v25 = vadd.f32 %v409_v18, %v293_v17 }
  0x9e   : > { %v298_v19 = vpop.permute.xlu0 %297 }
  0x9f   : > { %v307_v22 = vadd.f32 %v409_v18, %v298_v19 }
 0x105   : > { %v444_v21 = vpop.f32.mrb[0].mxu0 }
 0x106   : > { %v311_v23 = vmul.f32 %v444_v21, %v309_v20  ;;  %v278_v24 = vpop.f32.mrb[1].mxu0 }
 0x107   : > { %v310_v26 = vmul.f32 %v309_v20, %v278_v24 }
 0x108   : > { %v313_v27 = vadd.f32 %v311_v23, %v307_v22 }
 0x109   : > { %v312_v28 = vadd.f32 %v310_v26, %v306_v25 }
 0x10a   : > { %v315_v29 = vmin.f32 %v313_v27, 0.0 }
 0x10b   : > { %v314_v30 = vmin.f32 %v312_v28, 0.0 }
 0x10c   : > { %v318_v31 = vmul.f32 1.442695, %v315_v29 }
 0x10d   : > { %v316_v32 = vmul.f32 1.442695, %v314_v30 }
 0x10e   : > { %504 = vpow2.f32 %v318_v31 }
 0x10f   : > { %506 = vpow2.f32 %v316_v32 }
 0x118   : > { %v505_v33 = vpop.eup %504 }
 0x119   : > { %v507_v34 = vpop.eup %506  ;;  %322 = vst.msk [vmem:[%s192_s15 + $0x8] sm:$0xff] %vm320_vm0, %v505_v33 }
 0x11a   : > { %321 = vst.msk [vmem:[%s192_s15] sm:$0xff] %vm320_vm0, %v507_v34 }
 0x11b   : > { %521 = shalt.err (!%p518_p3)
}
 0x11c   : > { %s522_s6 = scalar_lea.hbm %s692_s24, 256  ;;  %s526_s9 = scalar_lea.hbm %s741_s4, 1024 }
 0x11d   : > { %p523_p4 = scmp.ne.s32.totalorder %s692_s24, %s522_s6  ;;  %p527_p9 = scmp.lt.u32.totalorder %s692_s24, %s741_s4 }
 0x11e   : > { %p528_p10 = scmp.lt.u32.totalorder %s526_s9, %s522_s6  ;;  %p530_p12 = scmp.lt.u32.totalorder %s522_s6, %s692_s24 }
 0x11f   : > { %p524_p7 = pnand %p523_p4, %p642_p5 }
 0x120   : > { %p529_p11 = por %p528_p10, %p527_p9 }
 0x121   : > { %p525_p8 = pneg %p524_p7 }
 0x122   : > { %p531_p13 = por %p530_p12, %p529_p11 }
 0x124   : > { %p532_p0 = pnand %p531_p13, %p525_p8 }
 0x126   : > { %535 = shalt.err (!%p532_p0)
}
 0x127   : > { %s574_s12 = smov 128   ;;  %s575_s13 = smov 8  }
 0x128   : > { %461 = dma.vmem_to_hbm [thread:$0]  (%p642_p5), %s694_s16, 256, %s692_s24, %s696_s28, %s574_s12, %s574_s12, %s575_s13  }
 0x129 PF: > { %p467_p1 = scmp.ge.s32.totalorder %s570_s20, 2  ;;  %s352_s14 = sand.u32 1, %s558_s17  }
 0x12a   : > { %s353_s15 = scalar_lea.sflag [#allocation4], %s352_s14 }
 0x12b   : > { %p464_p2 = pnand %p467_p1, %p646_p6 }
 0x12d   : > { %553 = dma.done.wait (!%p464_p2), %s353_s15, 256  }
 0x12e   : > { %555 = vsyncadd (!%p464_p2), %s353_s15, 4294967040  ;;  %p15_p3 = scmp.ge.s32.totalorder %s629_s22, 6   ;;  %s744_s17 = smov %s562_s18 }
 0x12f   : > { %s745_s18 = smov %s566_s19  ;;  %s746_s19 = smov %s640_s25 }
 0x130   : > { %s747_s20 = smov %s629_s22  ;;  %17 = sbr.rel (!%p15_p3) target bundleno = 5 (0x5), region = 72 }
 0x137   :  { %358 = vsyncpa [#allocation4], 1 }
 0x138   :  { %360 = vsyncpa [#allocation4 + $0x1], 1 }

</bundles_post_ra>
